<compile_context>
chip_gen: v5e
topology: v5e:2x2
jax: 0.10.0
libtpu: 0.0.40
codegen_flags: <defaults>
</compile_context>

<pallas_src>
import functools

import jax
import jax.numpy as jnp
from jax import lax
from jax.experimental import pallas as pl
from jax.experimental.pallas import tpu as pltpu


def _static_pow(x, gamma):
    """x ** gamma, lowered to plain VPU multiplies for small non-negative integer gamma."""
    if isinstance(gamma, (int, float)) and float(gamma).is_integer() and gamma >= 0:
        g = int(gamma)
        if g == 0:
            return jnp.ones_like(x)
        r = x
        for _ in range(g - 1):
            r = r * x
        return r
    return x ** gamma


def _fused_loss_kernel(*refs, gamma, size_average, reg_weight, total_b, has_reg):
    if has_reg:
        pred_ref, tgt_ref, alpha_ref, a_ref, o_ref, acc_ref = refs
    else:
        pred_ref, tgt_ref, alpha_ref, o_ref, acc_ref = refs
        a_ref = None

    step = pl.program_id(0)

    @pl.when(step == 0)
    def _():
        acc_ref[0] = jnp.float32(0.0)   # sum_b w_b * nll_b
        acc_ref[1] = jnp.float32(0.0)   # sum_b w_b
        acc_ref[2] = jnp.float32(0.0)   # sum_b (1 - pn_b)^gamma
        acc_ref[3] = jnp.float32(0.0)   # sum_b ||I - A_b A_b^T||_F^2

    # ---- focal-weighted cross-entropy statistics -------------------------------------
    x = pred_ref[...].astype(jnp.float32)                     # (TB, C)
    tb, c = x.shape
    t = tgt_ref[...]                                          # (TB, 1) int32
    aw = alpha_ref[...].astype(jnp.float32)                   # (1, C)

    m = jnp.max(x, axis=-1, keepdims=True)
    z = x - m                                                 # shifted logits
    sum_exp = jnp.sum(jnp.exp(z), axis=-1, keepdims=True)
    lse = jnp.log(sum_exp)

    cls = lax.broadcasted_iota(jnp.int32, (tb, c), 1)
    onehot = (cls == t).astype(jnp.float32)                   # (TB, C) one-hot of target

    z_t = jnp.sum(z * onehot, axis=-1, keepdims=True)         # (TB, 1) shifted logit @ target
    logp_t = z_t - lse                                        # (TB, 1) log p_target
    pn = jnp.exp(logp_t)                                      # softmax prob of target class
    w = jnp.sum(aw * onehot, axis=-1, keepdims=True)          # (TB, 1) per-sample class weight

    acc_ref[0] += jnp.sum(w * (-logp_t))
    acc_ref[1] += jnp.sum(w)
    acc_ref[2] += jnp.sum(_static_pow(1.0 - pn, gamma))

    # ---- orthogonality regularizer ----------------------------------------------------
    if has_reg:
        a = a_ref[...]                                        # (TB, 64, 64), native dtype
        # Batched A @ A^T on the MXU, contracting the last dims (no explicit transpose).
        m_aa = jnp.einsum("bij,bkj->bik", a, a,
                          preferred_element_type=jnp.float32)  # (TB, 64, 64)
        af = a.astype(jnp.float32)
        n = a.shape[-1]
        # sum_b ||I - M_b||_F^2 = TB*n - 2*sum(A^2) + sum(M^2)   (trace(A A^T) = sum(A^2))
        acc_ref[3] += (jnp.float32(tb * n)
                       - 2.0 * jnp.sum(af * af)
                       + jnp.sum(m_aa * m_aa))

    # ---- finalize on the last grid step ------------------------------------------------
    @pl.when(step == pl.num_programs(0) - 1)
    def _():
        ce = acc_ref[0] / acc_ref[1]                          # weighted-mean CE
        focal_sum = acc_ref[2]
        if size_average:
            base = ce * focal_sum / jnp.float32(total_b)
        else:
            base = ce * focal_sum
        if has_reg:
            base = base + (jnp.float32(reg_weight) * jnp.sqrt(acc_ref[3])
                           / jnp.float32(total_b))
        o_ref[0, 0] = base


def _pick_batch_tile(b, cap=128):
    """Largest sublane-aligned tile <= cap that evenly divides b (or b itself)."""
    if b % 8 != 0 or b <= cap:
        return b
    tb = cap
    while b % tb != 0:
        tb -= 8
    return tb


def pointnet_loss(predictions, targets, A=None, *, alpha=None, gamma=0,
                  reg_weight=0.0, size_average=True, tile_cap=128):
    """Fused Pallas implementation of PointNetLoss.forward (returns a scalar)."""
    b, c = predictions.shape

    if alpha is None:
        alpha_vec = jnp.ones((1, c), jnp.float32)
    else:
        alpha_arr = jnp.asarray(alpha, jnp.float32)
        if alpha_arr.ndim == 0:                               # scalar alpha -> [alpha, 1 - alpha]
            alpha_arr = jnp.stack([alpha_arr, 1.0 - alpha_arr])
        alpha_vec = alpha_arr.reshape(1, -1)

    tgt = targets.astype(jnp.int32).reshape(b, 1)

    has_reg = (reg_weight > 0) and (A is not None)
    if has_reg and A.shape[0] != b:
        raise ValueError("A must have the same batch dimension as predictions")

    tb = _pick_batch_tile(b, cap=tile_cap)
    grid = (b // tb,)

    in_specs = [
        pl.BlockSpec((tb, c), lambda i: (i, 0)),
        pl.BlockSpec((tb, 1), lambda i: (i, 0)),
        pl.BlockSpec((1, c), lambda i: (0, 0)),
    ]
    inputs = [predictions, tgt, alpha_vec]
    if has_reg:
        in_specs.append(pl.BlockSpec((tb, A.shape[1], A.shape[2]), lambda i: (i, 0, 0)))
        inputs.append(A)

    out = pl.pallas_call(
        functools.partial(
            _fused_loss_kernel, gamma=gamma, size_average=size_average,
            reg_weight=float(reg_weight), total_b=b, has_reg=has_reg),
        out_shape=jax.ShapeDtypeStruct((1, 1), jnp.float32),
        grid=grid,
        in_specs=in_specs,
        out_specs=pl.BlockSpec((1, 1), lambda i: (0, 0),
                               memory_space=pltpu.MemorySpace.SMEM),
        scratch_shapes=[pltpu.SMEM((4,), jnp.float32)],
        compiler_params=pltpu.CompilerParams(
            dimension_semantics=("arbitrary",)),              # grid accumulates into SMEM scratch
    )(*inputs)
    return out[0, 0]


def _reference_loss(pred, tgt, A, alpha_vec, gamma, reg_weight, size_average):
    """Pure-JAX reference mirroring the PyTorch semantics."""
    b = pred.shape[0]
    logp = jax.nn.log_softmax(pred, axis=1)
    logp_t = logp[jnp.arange(b), tgt]
    w = alpha_vec[tgt]
    ce = jnp.sum(-w * logp_t) / jnp.sum(w)
    pn = jnp.exp(logp_t)
    loss = (1.0 - pn) ** gamma * ce
    out = loss.mean() if size_average else loss.sum()
    if reg_weight > 0 and A is not None:
        eye = jnp.eye(A.shape[-1], dtype=jnp.float32)[None]
        d = eye - jnp.einsum("bij,bkj->bik", A, A)
        out = out + reg_weight * jnp.sqrt(jnp.sum(d * d)) / b
    return out


if __name__ == "__main__":
    key = jax.random.PRNGKey(0)
    k1, k2, k3 = jax.random.split(key, 3)

    # ---- small test: single grid step, focal + orthogonality regularizer ----
    B, C = 8, 16
    predictions = jax.random.normal(k1, (B, C), dtype=jnp.float32)
    targets = jax.random.randint(k2, (B,), 0, C, dtype=jnp.int32)
    A = jax.random.normal(k3, (B, 64, 64), dtype=jnp.float32) * 0.1

    alpha = [float((i % 4) + 1) for i in range(C)]
    gamma = 2
    reg_weight = 1e-3

    out = pointnet_loss(predictions, targets, A, alpha=alpha, gamma=gamma,
                        reg_weight=reg_weight, size_average=True)
    out = jax.block_until_ready(out)
    ref = _reference_loss(predictions, targets, A,
                          jnp.asarray(alpha, jnp.float32), gamma, reg_weight, True)
    assert jnp.allclose(out, ref, rtol=1e-3, atol=1e-4), (out, ref)

    # ---- no-regularizer path (reg_weight = 0, A ignored) ----
    out2 = pointnet_loss(predictions, targets, None, alpha=alpha, gamma=gamma,
                         reg_weight=0.0, size_average=False)
    out2 = jax.block_until_ready(out2)
    ref2 = _reference_loss(predictions, targets, None,
                           jnp.asarray(alpha, jnp.float32), gamma, 0.0, False)
    assert jnp.allclose(out2, ref2, rtol=1e-3, atol=1e-4), (out2, ref2)

    # ---- multi-grid-step accumulation path (forced small tile) ----
    k4, k5, k6 = jax.random.split(jax.random.PRNGKey(1), 3)
    B2 = 32
    pred2 = jax.random.normal(k4, (B2, C), dtype=jnp.float32)
    tgt2 = jax.random.randint(k5, (B2,), 0, C, dtype=jnp.int32)
    A2 = jax.random.normal(k6, (B2, 64, 64), dtype=jnp.float32) * 0.1
    out3 = pointnet_loss(pred2, tgt2, A2, alpha=alpha, gamma=gamma,
                         reg_weight=reg_weight, size_average=True, tile_cap=8)
    out3 = jax.block_until_ready(out3)
    ref3 = _reference_loss(pred2, tgt2, A2,
                           jnp.asarray(alpha, jnp.float32), gamma, reg_weight, True)
    assert jnp.allclose(out3, ref3, rtol=1e-3, atol=1e-4), (out3, ref3)

    print("KERNEL_OK")
</pallas_src>

<mosaic_0001>
module attributes {stable_mosaic.version = 11 : i64} {
  func.func @_fused_loss_kernel(%arg0: i32, %arg1: memref<8x16xf32, #tpu.memory_space<vmem>>, %arg2: memref<8x1xi32, #tpu.memory_space<vmem>>, %arg3: memref<1x16xf32, #tpu.memory_space<vmem>>, %arg4: memref<8x64x64xf32, #tpu.memory_space<vmem>>, %arg5: memref<1x1xf32, #tpu.memory_space<smem>>, %arg6: memref<4xf32, #tpu.memory_space<smem>>) attributes {dimension_semantics = [#tpu.dimension_semantics<arbitrary>], iteration_bounds = array<i64: 1>, scalar_prefetch = 0 : i64, scratch_operands = 1 : i64, tpu.core_type = #tpu.core_type<tc>, window_params = [{transform_indices = @transform_0, window_bounds = array<i64: 8, 16>}, {transform_indices = @transform_1, window_bounds = array<i64: 8, 1>}, {pipeline_mode = #tpu.pipeline_mode<synchronous>, transform_indices = @transform_2, window_bounds = array<i64: 1, 16>}, {transform_indices = @transform_3, window_bounds = array<i64: 8, 64, 64>}, {transform_indices = @transform_4, window_bounds = array<i64: 1, 1>}]} {
    %c0_i32 = arith.constant 0 : i32
    %0 = arith.cmpi eq, %arg0, %c0_i32 : i32
    %1 = arith.extui %0 : i1 to i32
    %c0_i32_0 = arith.constant 0 : i32
    %2 = arith.cmpi ne, %1, %c0_i32_0 : i32
    scf.if %2 {
      %cst_29 = arith.constant 0.000000e+00 : f32
      %c0_30 = arith.constant 0 : index
      %76 = memref.load %arg6[%c0_30] : memref<4xf32, #tpu.memory_space<smem>>
      memref.store %cst_29, %arg6[%c0_30] : memref<4xf32, #tpu.memory_space<smem>>
      %cst_31 = arith.constant 0.000000e+00 : f32
      %c1_32 = arith.constant 1 : index
      %77 = memref.load %arg6[%c1_32] : memref<4xf32, #tpu.memory_space<smem>>
      memref.store %cst_31, %arg6[%c1_32] : memref<4xf32, #tpu.memory_space<smem>>
      %cst_33 = arith.constant 0.000000e+00 : f32
      %c2_34 = arith.constant 2 : index
      %78 = memref.load %arg6[%c2_34] : memref<4xf32, #tpu.memory_space<smem>>
      memref.store %cst_33, %arg6[%c2_34] : memref<4xf32, #tpu.memory_space<smem>>
      %cst_35 = arith.constant 0.000000e+00 : f32
      %c3_36 = arith.constant 3 : index
      %79 = memref.load %arg6[%c3_36] : memref<4xf32, #tpu.memory_space<smem>>
      memref.store %cst_35, %arg6[%c3_36] : memref<4xf32, #tpu.memory_space<smem>>
    } else {
    }
    %c0 = arith.constant 0 : index
    %c0_1 = arith.constant 0 : index
    %3 = vector.load %arg1[%c0, %c0_1] : memref<8x16xf32, #tpu.memory_space<vmem>>, vector<8x16xf32>
    %c0_2 = arith.constant 0 : index
    %c0_3 = arith.constant 0 : index
    %4 = vector.load %arg2[%c0_2, %c0_3] : memref<8x1xi32, #tpu.memory_space<vmem>>, vector<8x1xi32>
    %c0_4 = arith.constant 0 : index
    %c0_5 = arith.constant 0 : index
    %5 = vector.load %arg3[%c0_4, %c0_5] : memref<1x16xf32, #tpu.memory_space<vmem>>, vector<1x16xf32>
    %cst = arith.constant dense<0xFF800000> : vector<8xf32>
    %6 = vector.multi_reduction <maximumf>, %3, %cst [1] : vector<8x16xf32> to vector<8xf32>
    %7 = vector.shape_cast %6 : vector<8xf32> to vector<8x1xf32>
    %8 = vector.broadcast %7 : vector<8x1xf32> to vector<8x16xf32>
    %9 = arith.subf %3, %8 : vector<8x16xf32>
    %10 = math.exp %9 : vector<8x16xf32>
    %cst_6 = arith.constant dense<0.000000e+00> : vector<8xf32>
    %11 = vector.multi_reduction <add>, %10, %cst_6 [1] : vector<8x16xf32> to vector<8xf32>
    %12 = vector.shape_cast %11 : vector<8xf32> to vector<8x1xf32>
    %13 = math.log %12 : vector<8x1xf32>
    %14 = tpu.iota {dimensions = array<i32: 1>} : vector<8x16xi32>
    %15 = vector.broadcast %4 : vector<8x1xi32> to vector<8x16xi32>
    %16 = arith.cmpi eq, %14, %15 : vector<8x16xi32>
    %17 = arith.extui %16 : vector<8x16xi1> to vector<8x16xi32>
    %18 = arith.sitofp %17 : vector<8x16xi32> to vector<8x16xf32>
    %19 = arith.mulf %9, %18 : vector<8x16xf32>
    %cst_7 = arith.constant dense<0.000000e+00> : vector<8xf32>
    %20 = vector.multi_reduction <add>, %19, %cst_7 [1] : vector<8x16xf32> to vector<8xf32>
    %21 = vector.shape_cast %20 : vector<8xf32> to vector<8x1xf32>
    %22 = arith.subf %21, %13 : vector<8x1xf32>
    %23 = math.exp %22 : vector<8x1xf32>
    %24 = vector.broadcast %5 : vector<1x16xf32> to vector<8x16xf32>
    %25 = arith.mulf %24, %18 : vector<8x16xf32>
    %cst_8 = arith.constant dense<0.000000e+00> : vector<8xf32>
    %26 = vector.multi_reduction <add>, %25, %cst_8 [1] : vector<8x16xf32> to vector<8xf32>
    %27 = vector.shape_cast %26 : vector<8xf32> to vector<8x1xf32>
    %c0_9 = arith.constant 0 : index
    %28 = memref.load %arg6[%c0_9] : memref<4xf32, #tpu.memory_space<smem>>
    %cst_10 = arith.constant 0.000000e+00 : f32
    %29 = vector.broadcast %cst_10 : f32 to vector<8x1xf32>
    %30 = arith.subf %29, %22 : vector<8x1xf32>
    %31 = arith.mulf %27, %30 : vector<8x1xf32>
    %32 = vector.shape_cast %31 : vector<8x1xf32> to vector<1x8x1xf32>
    %cst_11 = arith.constant dense<0.000000e+00> : vector<1xf32>
    %33 = vector.multi_reduction <add>, %32, %cst_11 [1, 2] : vector<1x8x1xf32> to vector<1xf32>
    %34 = vector.shape_cast %33 : vector<1xf32> to vector<1x1x1xf32>
    %35 = vector.extract %34[0, 0, 0] : f32 from vector<1x1x1xf32>
    %36 = arith.addf %28, %35 : f32
    %c0_12 = arith.constant 0 : index
    %37 = memref.load %arg6[%c0_12] : memref<4xf32, #tpu.memory_space<smem>>
    memref.store %36, %arg6[%c0_12] : memref<4xf32, #tpu.memory_space<smem>>
    %c1 = arith.constant 1 : index
    %38 = memref.load %arg6[%c1] : memref<4xf32, #tpu.memory_space<smem>>
    %39 = vector.shape_cast %27 : vector<8x1xf32> to vector<1x8x1xf32>
    %cst_13 = arith.constant dense<0.000000e+00> : vector<1xf32>
    %40 = vector.multi_reduction <add>, %39, %cst_13 [1, 2] : vector<1x8x1xf32> to vector<1xf32>
    %41 = vector.shape_cast %40 : vector<1xf32> to vector<1x1x1xf32>
    %42 = vector.extract %41[0, 0, 0] : f32 from vector<1x1x1xf32>
    %43 = arith.addf %38, %42 : f32
    %c1_14 = arith.constant 1 : index
    %44 = memref.load %arg6[%c1_14] : memref<4xf32, #tpu.memory_space<smem>>
    memref.store %43, %arg6[%c1_14] : memref<4xf32, #tpu.memory_space<smem>>
    %c2 = arith.constant 2 : index
    %45 = memref.load %arg6[%c2] : memref<4xf32, #tpu.memory_space<smem>>
    %cst_15 = arith.constant 1.000000e+00 : f32
    %46 = vector.broadcast %cst_15 : f32 to vector<8x1xf32>
    %47 = arith.subf %46, %23 : vector<8x1xf32>
    %48 = arith.mulf %47, %47 : vector<8x1xf32>
    %49 = vector.shape_cast %48 : vector<8x1xf32> to vector<1x8x1xf32>
    %cst_16 = arith.constant dense<0.000000e+00> : vector<1xf32>
    %50 = vector.multi_reduction <add>, %49, %cst_16 [1, 2] : vector<1x8x1xf32> to vector<1xf32>
    %51 = vector.shape_cast %50 : vector<1xf32> to vector<1x1x1xf32>
    %52 = vector.extract %51[0, 0, 0] : f32 from vector<1x1x1xf32>
    %53 = arith.addf %45, %52 : f32
    %c2_17 = arith.constant 2 : index
    %54 = memref.load %arg6[%c2_17] : memref<4xf32, #tpu.memory_space<smem>>
    memref.store %53, %arg6[%c2_17] : memref<4xf32, #tpu.memory_space<smem>>
    %c0_18 = arith.constant 0 : index
    %c0_19 = arith.constant 0 : index
    %c0_20 = arith.constant 0 : index
    %55 = vector.load %arg4[%c0_18, %c0_19, %c0_20] : memref<8x64x64xf32, #tpu.memory_space<vmem>>, vector<8x64x64xf32>
    "tpu.trace_start"() <{level = 10 : i32, message = "bij,bkj->bik"}> : () -> ()
    %cst_21 = arith.constant dense<0.000000e+00> : vector<8x64x64xf32>
    %56 = tpu.matmul %55, %55, %cst_21 {dimension_numbers = #tpu.dot_dimension_numbers<[2], [2], [1], [1], [0, 0, 0, 1, 1, 1], [0], [0]>} : vector<8x64x64xf32>, vector<8x64x64xf32>, vector<8x64x64xf32> -> vector<8x64x64xf32>
    "tpu.trace_stop"() : () -> ()
    %c3 = arith.constant 3 : index
    %57 = memref.load %arg6[%c3] : memref<4xf32, #tpu.memory_space<smem>>
    %58 = arith.mulf %55, %55 : vector<8x64x64xf32>
    %59 = vector.shape_cast %58 : vector<8x64x64xf32> to vector<1x8x64x64xf32>
    %cst_22 = arith.constant dense<0.000000e+00> : vector<1xf32>
    %60 = vector.multi_reduction <add>, %59, %cst_22 [1, 2, 3] : vector<1x8x64x64xf32> to vector<1xf32>
    %61 = vector.shape_cast %60 : vector<1xf32> to vector<1x1x1x1xf32>
    %62 = vector.extract %61[0, 0, 0, 0] : f32 from vector<1x1x1x1xf32>
    %cst_23 = arith.constant 2.000000e+00 : f32
    %63 = arith.mulf %cst_23, %62 : f32
    %cst_24 = arith.constant 5.120000e+02 : f32
    %64 = arith.subf %cst_24, %63 : f32
    %65 = arith.mulf %56, %56 : vector<8x64x64xf32>
    %66 = vector.shape_cast %65 : vector<8x64x64xf32> to vector<1x8x64x64xf32>
    %cst_25 = arith.constant dense<0.000000e+00> : vector<1xf32>
    %67 = vector.multi_reduction <add>, %66, %cst_25 [1, 2, 3] : vector<1x8x64x64xf32> to vector<1xf32>
    %68 = vector.shape_cast %67 : vector<1xf32> to vector<1x1x1x1xf32>
    %69 = vector.extract %68[0, 0, 0, 0] : f32 from vector<1x1x1x1xf32>
    %70 = arith.addf %64, %69 : f32
    %71 = arith.addf %57, %70 : f32
    %c3_26 = arith.constant 3 : index
    %72 = memref.load %arg6[%c3_26] : memref<4xf32, #tpu.memory_space<smem>>
    memref.store %71, %arg6[%c3_26] : memref<4xf32, #tpu.memory_space<smem>>
    %c0_i32_27 = arith.constant 0 : i32
    %73 = arith.cmpi eq, %arg0, %c0_i32_27 : i32
    %74 = arith.extui %73 : i1 to i32
    %c0_i32_28 = arith.constant 0 : i32
    %75 = arith.cmpi ne, %74, %c0_i32_28 : i32
    scf.if %75 {
      %c0_29 = arith.constant 0 : index
      %76 = memref.load %arg6[%c0_29] : memref<4xf32, #tpu.memory_space<smem>>
      %c1_30 = arith.constant 1 : index
      %77 = memref.load %arg6[%c1_30] : memref<4xf32, #tpu.memory_space<smem>>
      %78 = arith.divf %76, %77 : f32
      %c2_31 = arith.constant 2 : index
      %79 = memref.load %arg6[%c2_31] : memref<4xf32, #tpu.memory_space<smem>>
      %80 = arith.mulf %78, %79 : f32
      %cst_32 = arith.constant 8.000000e+00 : f32
      %81 = arith.divf %80, %cst_32 : f32
      %c3_33 = arith.constant 3 : index
      %82 = memref.load %arg6[%c3_33] : memref<4xf32, #tpu.memory_space<smem>>
      %83 = math.sqrt %82 : f32
      %cst_34 = arith.constant 1.000000e-03 : f32
      %84 = arith.mulf %cst_34, %83 : f32
      %cst_35 = arith.constant 8.000000e+00 : f32
      %85 = arith.divf %84, %cst_35 : f32
      %86 = arith.addf %81, %85 : f32
      %c0_36 = arith.constant 0 : index
      %c0_37 = arith.constant 0 : index
      %87 = memref.load %arg5[%c0_36, %c0_37] : memref<1x1xf32, #tpu.memory_space<smem>>
      memref.store %86, %arg5[%c0_36, %c0_37] : memref<1x1xf32, #tpu.memory_space<smem>>
    } else {
    }
    return
  }
  func.func @transform_0(%arg0: i32) -> (i32, i32) {
    %c0_i32 = arith.constant 0 : i32
    %c0_i32_0 = arith.constant 0 : i32
    return %arg0, %c0_i32 : i32, i32
  }
  func.func @transform_1(%arg0: i32) -> (i32, i32) {
    %c0_i32 = arith.constant 0 : i32
    %c0_i32_0 = arith.constant 0 : i32
    return %arg0, %c0_i32 : i32, i32
  }
  func.func @transform_2(%arg0: i32) -> (i32, i32) {
    %c0_i32 = arith.constant 0 : i32
    %c0_i32_0 = arith.constant 0 : i32
    %c0_i32_1 = arith.constant 0 : i32
    return %c0_i32, %c0_i32_0 : i32, i32
  }
  func.func @transform_3(%arg0: i32) -> (i32, i32, i32) {
    %c0_i32 = arith.constant 0 : i32
    %c0_i32_0 = arith.constant 0 : i32
    %c0_i32_1 = arith.constant 0 : i32
    return %arg0, %c0_i32, %c0_i32_0 : i32, i32, i32
  }
  func.func @transform_4(%arg0: i32) -> (i32, i32) {
    %c0_i32 = arith.constant 0 : i32
    %c0_i32_0 = arith.constant 0 : i32
    %c0_i32_1 = arith.constant 0 : i32
    return %c0_i32, %c0_i32_0 : i32, i32
  }
}

</mosaic_0001>

<bundles_post_ra>
// kernel: tpu_custom_call.1
= control target key start
LH: loop header
LB: loop body
LE: loop exit
PB: predicated region body
PF: predicated region fallthrough
CT: control target
= control target key end

     0   :  { %9 = vsyncpa [#allocation4], 0  ;;  %s2201_s0 = inlined_call_operand.vmem [shape: f32[8,16], index: 0, kind: input, shape index: {}]   ;;  %s2202_s1 = inlined_call_operand.vmem [shape: s32[8,1], index: 1, kind: input, shape index: {}]   ;;  %s2203_s2 = inlined_call_operand.vmem [shape: f32[1,16], index: 2, kind: input, shape index: {}]   ;;  %s2204_s3 = inlined_call_operand.hbm [shape: f32[8,64,64], index: 3, kind: input, shape index: {}]   ;;  %s2205_s4 = inlined_call_operand.hbm [shape: f32[1,1], index: 4, kind: output, shape index: {}]  }
   0x1   :  { %10 = vsyncpa [#allocation5], 0  ;;  %s21_s17 = sshll.u32 %s2204_s3, 4  ;;  %s1411_s18 = smov [#allocation3]   ;;  %s22_s17 = int_to_ptr.hbm [resolvable:$true] %s21_s17 }
   0x2   :  { %s23_s19 = sshll.u32 %s1411_s18, 4  ;;  %s1412_s20 = smov 128   ;;  %s24_s19 = int_to_ptr.vmem [resolvable:$true] %s23_s19 }
   0x3   :  { %s1413_s21 = smov 8  }
   0x4   :  { %29 = dma.hbm_to_vmem [thread:$0]  %s22_s17, 8192, %s24_s19, [#allocation4], %s1412_s20, %s1412_s20, %s1413_s21  }
   0x5   :  { %1407 = dma.done.wait [#allocation4], 8192  }
   0x6   :  { %1408 = vsyncadd [#allocation4], 4294959104  ;;  %v1414_v0 = vmov 0   ;;  %vm194_vm0 = vcmask 523264   ;;  %vm49_vm1 = vcmask 130048   ;;  %v1446_v1 = vld [vmem:[#allocation3 + $0x38] sm:$0xff] }
   0x7   :  { %1357 = vset.pattern.permute.xlu0 %v1414_v0  ;;  %v1451_v2 = vld [vmem:[%s2201_s0] sm:$0xff]  ;;  %1202 = vmatpush.xpose.msk.msra.mxu0 %vm194_vm0, %v1446_v1  ;;  %v1457_v4 = vld [vmem:[#allocation3 + $0x30] sm:$0xff]  ;;  %v1459_v5 = vld [vmem:[#allocation3 + $0x78] sm:$0xff]  ;;  %v723_v35 = vmul.f32 %v1446_v1, %v1446_v1  ;;  %vm86_vm3 = vcmask 7168   ;;  %s1188_s15 = sshll.u32 %s2205_s4, 4  ;;  %s1417_s18 = smov [#allocation6]   ;;  %s1189_s15 = int_to_ptr.hbm [resolvable:$true] %s1188_s15 }
   0x8   :  { %v50_v3 = vsel %vm49_vm1, %v1451_v2, -inf  ;;  %1218 = vmatpush.xpose.msk.msra.mxu1 %vm194_vm0, %v1459_v5  ;;  %v1463_v6 = vld [vmem:[#allocation3 + $0x10] sm:$0xff]  ;;  %v1469_v9 = vld [vmem:[#allocation3 + $0x8] sm:$0xff]  ;;  %v1471_v10 = vld [vmem:[#allocation3 + $0xb8] sm:$0xff]  ;;  %v722_v31 = vmul.f32 %v1457_v4, %v1457_v4 }
   0x9   :  { %51 = vmax.xlane.f32.xlu0 %v50_v3  ;;  %v718_v7 = vmul.f32 %v1463_v6, %v1463_v6  ;;  %v1467_v8 = vld [vmem:[#allocation3 + $0x70] sm:$0xff]  ;;  %v1475_v11 = vld [vmem:[#allocation3 + $0x18] sm:$0xff]  ;;  %v717_v12 = vmul.f32 %v1469_v9, %v1469_v9  ;;  %1234 = vmatpush.xpose.msk.msra.mxu2 %vm194_vm0, %v1471_v10  ;;  %v1481_v13 = vld [vmem:[#allocation3] sm:$0xff]  ;;  %v793_v46 = vsel %vm194_vm0, %v723_v35, 0.0 }
   0xa   :  { %v1483_v14 = vld [vmem:[#allocation3 + $0x28] sm:$0xff]  ;;  %v719_v15 = vmul.f32 %v1475_v11, %v1475_v11  ;;  %v716_v16 = vmul.f32 %v1481_v13, %v1481_v13  ;;  %v1489_v17 = vld [vmem:[#allocation3 + $0xb0] sm:$0xff]  ;;  %v1491_v18 = vld [vmem:[#allocation3 + $0x20] sm:$0xff]  ;;  %v791_v40 = vsel %vm194_vm0, %v722_v31, 0.0 }
   0xb   :  { %1203 = vmatpush.xpose.msk.msra.mxu0 %vm194_vm0, %v1457_v4  ;;  %v781_v19 = vsel %vm194_vm0, %v717_v12, 0.0  ;;  %v720_v20 = vmul.f32 %v1491_v18, %v1491_v18  ;;  %v783_v21 = vsel %vm194_vm0, %v718_v7, 0.0  ;;  %v1499_v22 = vld [vmem:[#allocation3 + $0x68] sm:$0xff]  ;;  %v1506_v25 = vld [vmem:[#allocation3 + $0xf8] sm:$0xff]  ;;  %v721_v26 = vmul.f32 %v1483_v14, %v1483_v14  ;;  %v1517_v30 = vld [vmem:[#allocation3 + $0xf0] sm:$0xff] }
   0xc   :  { %1219 = vmatpush.xpose.msk.msra.mxu1 %vm194_vm0, %v1467_v8  ;;  %v780_v23 = vsel %vm194_vm0, %v716_v16, 0.0  ;;  %v785_v27 = vsel %vm194_vm0, %v719_v15, 0.0  ;;  %v1511_v28 = vld [vmem:[#allocation3 + $0xa8] sm:$0xff]  ;;  %1250 = vmatpush.xpose.msk.msra.mxu3 %vm194_vm0, %v1506_v25  ;;  %v1522_v33 = vld [vmem:[#allocation3 + $0x60] sm:$0xff]  ;;  %v1540_v41 = vld [vmem:[#allocation3 + $0x58] sm:$0xff]  ;;  %v729_v0 = vmul.f32 %v1499_v22, %v1499_v22 }
   0xd   :  { %v782_v24 = vadd.f32 %v781_v19, %v780_v23  ;;  %1235 = vmatpush.xpose.msk.msra.mxu2 %vm194_vm0, %v1489_v17  ;;  %v787_v32 = vsel %vm194_vm0, %v720_v20, 0.0  ;;  %v789_v36 = vsel %vm194_vm0, %v721_v26, 0.0  ;;  %v1531_v37 = vld [vmem:[#allocation3 + $0xa0] sm:$0xff]  ;;  %v1548_v44 = vld [vmem:[#allocation3 + $0x48] sm:$0xff]  ;;  %v1555_v48 = vld [vmem:[#allocation3 + $0x98] sm:$0xff]  ;;  %v727_v56 = vmul.f32 %v1540_v41, %v1540_v41 }
   0xe   :  { %v1537_v39 = vld [vmem:[#allocation3 + $0x40] sm:$0xff]  ;;  %v1550_v45 = vld [vmem:[#allocation3 + $0xe8] sm:$0xff]  ;;  %v725_v47 = vmul.f32 %v1548_v44, %v1548_v44  ;;  %v1564_v51 = vld [vmem:[#allocation3 + $0x50] sm:$0xff]  ;;  %v728_v60 = vmul.f32 %v1522_v33, %v1522_v33  ;;  %v730_v19 = vmul.f32 %v1467_v8, %v1467_v8  ;;  %v805_v26 = vsel %vm194_vm0, %v729_v0, 0.0 }
   0xf   :  { %1204 = vmatpush.xpose.msk.msra.mxu0 %vm194_vm0, %v1483_v14  ;;  %v784_v29 = vadd.f32 %v783_v21, %v782_v24  ;;  %v724_v42 = vmul.f32 %v1537_v39, %v1537_v39  ;;  %v47_v49 = vld [vmem:[%s2202_s1] sm:$0xff]  ;;  %v726_v53 = vmul.f32 %v1564_v51, %v1564_v51  ;;  %v1578_v58 = vld [vmem:[#allocation3 + $0x90] sm:$0xff]  ;;  %v1591_v63 = vld [vmem:[#allocation3 + $0xd8] sm:$0xff]  ;;  %v801_v3 = vsel %vm194_vm0, %v727_v56, 0.0 }
  0x10   :  { %1220 = vmatpush.xpose.msk.msra.mxu1 %vm194_vm0, %v1499_v22  ;;  %1251 = vmatpush.xpose.msk.msra.mxu3 %vm194_vm0, %v1517_v30  ;;  %v1566_v52 = vld [vmem:[#allocation3 + $0xe0] sm:$0xff]  ;;  %v797_v57 = vsel %vm194_vm0, %v725_v47, 0.0  ;;  %v1596_v7 = vld [vmem:[#allocation3 + $0x88] sm:$0xff]  ;;  %v1600_v12 = vld [vmem:[#allocation3 + $0x138] sm:$0xff]  ;;  %v803_v20 = vsel %vm194_vm0, %v728_v60, 0.0  ;;  %v731_v24 = vmul.f32 %v1459_v5, %v1459_v5  ;;  %v734_v47 = vmul.f32 %v1578_v58, %v1578_v58 }
  0x11   :  { %v786_v34 = vadd.f32 %v785_v27, %v784_v29  ;;  %1236 = vmatpush.xpose.msk.msra.mxu2 %vm194_vm0, %v1511_v28  ;;  %v795_v54 = vsel %vm194_vm0, %v724_v42, 0.0  ;;  %v799_v61 = vsel %vm194_vm0, %v726_v53, 0.0  ;;  %v1604_v16 = vld [vmem:[#allocation3 + $0xd0] sm:$0xff]  ;;  %v1611_v23 = vld [vmem:[#allocation3 + $0x178] sm:$0xff]  ;;  %v146_v27 = vld [vmem:[#allocation3 + $0x80] sm:$0xff]  ;;  %v736_v60 = vmul.f32 %v1531_v37, %v1531_v37 }
  0x12   :  { %v1622_v29 = vld [vmem:[#allocation3 + $0x130] sm:$0xff]  ;;  %v1631_v35 = vld [vmem:[#allocation3 + $0x1b8] sm:$0xff]  ;;  %v809_v42 = vsel %vm194_vm0, %v731_v24, 0.0  ;;  %v738_v24 = vmul.f32 %v1489_v17, %v1489_v17 }
  0x13   :  { %1205 = vmatpush.xpose.msk.msra.mxu0 %vm194_vm0, %v1491_v18  ;;  %v788_v38 = vadd.f32 %v787_v32, %v786_v34  ;;  %v807_v32 = vsel %vm194_vm0, %v730_v19, 0.0  ;;  %v732_v34 = vmul.f32 %v146_v27, %v146_v27 }
  0x14   :  { %1221 = vmatpush.xpose.msk.msra.mxu1 %vm194_vm0, %v1522_v33  ;;  %1252 = vmatpush.xpose.msk.msra.mxu3 %vm194_vm0, %v1550_v45 }
  0x15   :  { %v790_v43 = vadd.f32 %v789_v36, %v788_v38  ;;  %1237 = vmatpush.xpose.msk.msra.mxu2 %vm194_vm0, %v1531_v37  ;;  %v1634_v38 = vld [vmem:[#allocation3 + $0x170] sm:$0xff] }
  0x17   :  { %1206 = vmatpush.xpose.msk.msra.mxu0 %vm194_vm0, %v1475_v11  ;;  %v792_v50 = vadd.f32 %v791_v40, %v790_v43  ;;  %v1636_v40 = vld [vmem:[#allocation3 + $0xc8] sm:$0xff] }
  0x18   :  { %1222 = vmatpush.xpose.msk.msra.mxu1 %vm194_vm0, %v1540_v41  ;;  %1253 = vmatpush.xpose.msk.msra.mxu3 %vm194_vm0, %v1566_v52 }
  0x19   :  { %v794_v55 = vadd.f32 %v793_v46, %v792_v50  ;;  %1238 = vmatpush.xpose.msk.msra.mxu2 %vm194_vm0, %v1555_v48  ;;  %v1645_v46 = vld [vmem:[#allocation3 + $0x128] sm:$0xff]  ;;  %v154_v50 = vld [vmem:[#allocation3 + $0xc0] sm:$0xff] }
  0x1b   :  { %1207 = vmatpush.xpose.msk.msra.mxu0 %vm194_vm0, %v1463_v6  ;;  %v796_v59 = vadd.f32 %v795_v54, %v794_v55  ;;  %v1659_v54 = vld [vmem:[#allocation3 + $0x168] sm:$0xff]  ;;  %v735_v55 = vmul.f32 %v1555_v48, %v1555_v48 }
  0x1c   :  { %1223 = vmatpush.xpose.msk.msra.mxu1 %vm194_vm0, %v1564_v51  ;;  %1254 = vmatpush.xpose.msk.msra.mxu3 %vm194_vm0, %v1591_v63 }
  0x1d   :  { %64 = vperm.xlu0 %1357, %v47_v49   ;;  %v798_v62 = vadd.f32 %v797_v57, %v796_v59  ;;  %1239 = vmatpush.xpose.msk.msra.mxu2 %vm194_vm0, %v1578_v58  ;;  %v811_v49 = vsel %vm194_vm0, %v732_v34, 0.0  ;;  %v1666_v59 = vld [vmem:[#allocation3 + $0x120] sm:$0xff]  ;;  %v817_v19 = vsel %vm194_vm0, %v735_v55, 0.0  ;;  %v1710_v34 = vld [vmem:[#allocation3 + $0x110] sm:$0xff]  ;;  %v742_v55 = vmul.f32 %v1604_v16, %v1604_v16 }
  0x1f   :  { %1208 = vmatpush.xpose.msk.msra.mxu0 %vm194_vm0, %v1469_v9  ;;  %v800_v15 = vadd.f32 %v799_v61, %v798_v62  ;;  %v815_v61 = vsel %vm194_vm0, %v734_v47, 0.0  ;;  %v1678_v62 = vld [vmem:[#allocation3 + $0x1a8] sm:$0xff]  ;;  %v1723_v47 = vld [vmem:[#allocation3 + $0x1f0] sm:$0xff] }
  0x20   :  { %1224 = vmatpush.xpose.msk.msra.mxu1 %vm194_vm0, %v1548_v44  ;;  %1255 = vmatpush.xpose.msk.msra.mxu3 %vm194_vm0, %v1604_v16 }
  0x21   :  { %v802_v21 = vadd.f32 %v801_v3, %v800_v15  ;;  %1240 = vmatpush.xpose.msk.msra.mxu2 %vm194_vm0, %v1596_v7  ;;  %v1680_v3 = vld [vmem:[#allocation3 + $0x160] sm:$0xff]  ;;  %v737_v15 = vmul.f32 %v1511_v28, %v1511_v28 }
  0x23   :  { %1209 = vmatpush.xpose.msk.msra.mxu0 %vm194_vm0, %v1481_v13  ;;  %v804_v31 = vadd.f32 %v803_v20, %v802_v21  ;;  %v1691_v21 = vld [vmem:[#allocation3 + $0x118] sm:$0xff] }
  0x24   :  { %1225 = vmatpush.xpose.msk.msra.mxu1 %vm194_vm0, %v1537_v39  ;;  %1256 = vmatpush.xpose.msk.msra.mxu3 %vm194_vm0, %v1636_v40 }
  0x25   :  { %v806_v36 = vadd.f32 %v805_v26, %v804_v31  ;;  %1241 = vmatpush.xpose.msk.msra.mxu2 %vm194_vm0, %v146_v27  ;;  %v819_v26 = vsel %vm194_vm0, %v736_v60, 0.0  ;;  %v821_v31 = vsel %vm194_vm0, %v737_v15, 0.0  ;;  %v1755_v15 = vld [vmem:[#allocation3 + $0x150] sm:$0xff] }
  0x26   :  { %1210 = vmatmul.msk.f32.vlgmr.msra.gmra.mxu0 %vm194_vm0, %v1481_v13  ;;  %v733_v13 = vmul.f32 %v1596_v7, %v1596_v7 }
  0x27   :  { %1266 = vmatpush.xpose.msk.msrb.mxu0 %vm194_vm0, %v1600_v12  ;;  %1226 = vmatmul.msk.f32.vlgmr.msra.gmra.mxu1 %vm194_vm0, %v1537_v39  ;;  %v808_v43 = vadd.f32 %v807_v32, %v806_v36  ;;  %v1657_v39 = vld [vmem:[#allocation3 + $0x1b0] sm:$0xff]  ;;  %v740_v36 = vmul.f32 %v154_v50, %v154_v50 }
  0x28   :  { %1282 = vmatpush.xpose.msk.msrb.mxu1 %vm194_vm0, %v1611_v23  ;;  %1242 = vmatmul.msk.f32.vlgmr.msra.gmra.mxu2 %vm194_vm0, %v146_v27  ;;  %v813_v56 = vsel %vm194_vm0, %v733_v13, 0.0  ;;  %v739_v27 = vmul.f32 %v1471_v10, %v1471_v10  ;;  %v1717_v13 = vld [vmem:[#allocation3 + $0x1a0] sm:$0xff] }
  0x29   :  { %1298 = vmatpush.xpose.msk.msrb.mxu2 %vm194_vm0, %v1631_v35  ;;  %v810_v53 = vadd.f32 %v809_v42, %v808_v43  ;;  %1257 = vmatpush.xpose.msk.msra.mxu3 %vm194_vm0, %v154_v50  ;;  %v1715_v42 = vld [vmem:[#allocation3 + $0x158] sm:$0xff] }
  0x2b   :  { %1267 = vmatpush.xpose.msk.msrb.mxu0 %vm194_vm0, %v1622_v29  ;;  %v812_v57 = vadd.f32 %v811_v49, %v810_v53  ;;  %v825_v49 = vsel %vm194_vm0, %v739_v27, 0.0  ;;  %v1732_v53 = vld [vmem:[#allocation3 + $0x108] sm:$0xff]  ;;  %v746_v27 = vmul.f32 %v1517_v30, %v1517_v30 }
  0x2c   :  { %1283 = vmatpush.xpose.msk.msrb.mxu1 %vm194_vm0, %v1634_v38  ;;  %1258 = vmatmul.msk.f32.vlgmr.msra.gmra.mxu3 %vm194_vm0, %v154_v50 }
  0x2d   :  { %1299 = vmatpush.xpose.msk.msrb.mxu2 %vm194_vm0, %v1657_v39  ;;  %v814_v0 = vadd.f32 %v813_v56, %v812_v57  ;;  %v827_v56 = vsel %vm194_vm0, %v740_v36, 0.0  ;;  %v743_v57 = vmul.f32 %v1591_v63, %v1591_v63 }
  0x2e   :  { %1211 = vmatmul.msk.f32.gmra.mxu0 %vm194_vm0, %v1469_v9  ;;  %v1689_v9 = vld [vmem:[#allocation3 + $0x1f8] sm:$0xff] }
  0x2f   :  { %1268 = vmatpush.xpose.msk.msrb.mxu0 %vm194_vm0, %v1645_v46  ;;  %1227 = vmatmul.msk.f32.gmra.mxu1 %vm194_vm0, %v1548_v44  ;;  %v816_v20 = vadd.f32 %v815_v61, %v814_v0  ;;  %v744_v61 = vmul.f32 %v1566_v52, %v1566_v52  ;;  %v1753_v0 = vld [vmem:[#allocation3 + $0x100] sm:$0xff] }
  0x30   :  { %1284 = vmatpush.xpose.msk.msrb.mxu1 %vm194_vm0, %v1659_v54  ;;  %1243 = vmatmul.msk.f32.gmra.mxu2 %vm194_vm0, %v1596_v7  ;;  %v823_v7 = vsel %vm194_vm0, %v738_v24, 0.0  ;;  %v1763_v24 = vld [vmem:[#allocation3 + $0x1e8] sm:$0xff] }
  0x31   :  { %1300 = vmatpush.xpose.msk.msrb.mxu2 %vm194_vm0, %v1678_v62  ;;  %v818_v44 = vadd.f32 %v817_v19, %v816_v20  ;;  %1314 = vmatpush.xpose.msk.msrb.mxu3 %vm194_vm0, %v1689_v9  ;;  %v1757_v19 = vld [vmem:[#allocation3 + $0x198] sm:$0xff] }
  0x33   :  { %1269 = vmatpush.xpose.msk.msrb.mxu0 %vm194_vm0, %v1666_v59  ;;  %v820_v32 = vadd.f32 %v819_v26, %v818_v44  ;;  %v833_v26 = vsel %vm194_vm0, %v743_v57, 0.0 }
  0x34   :  { %1285 = vmatpush.xpose.msk.msrb.mxu1 %vm194_vm0, %v1680_v3  ;;  %1259 = vmatmul.msk.f32.gmra.mxu3 %vm194_vm0, %v1636_v40 }
  0x35   :  { %v822_v43 = vadd.f32 %v821_v31, %v820_v32  ;;  %1301 = vmatpush.xpose.msk.msrb.mxu2 %vm194_vm0, %v1717_v13  ;;  %1315 = vmatpush.xpose.msk.msrb.mxu3 %vm194_vm0, %v1723_v47  ;;  %v835_v31 = vsel %vm194_vm0, %v744_v61, 0.0 }
  0x36   :  { %1212 = vmatmul.msk.f32.gmra.mxu0 %vm194_vm0, %v1463_v6  ;;  %v741_v6 = vmul.f32 %v1636_v40, %v1636_v40 }
  0x37   :  { %1270 = vmatpush.xpose.msk.msrb.mxu0 %vm194_vm0, %v1691_v21  ;;  %1228 = vmatmul.msk.f32.gmra.mxu1 %vm194_vm0, %v1564_v51  ;;  %v824_v50 = vadd.f32 %v823_v7, %v822_v43  ;;  %v748_v43 = vmul.f32 %v1753_v0, %v1753_v0 }
  0x38   :  { %1286 = vmatpush.xpose.msk.msrb.mxu1 %vm194_vm0, %v1715_v42  ;;  %1244 = vmatmul.msk.f32.gmra.mxu2 %vm194_vm0, %v1578_v58  ;;  %v829_v60 = vsel %vm194_vm0, %v741_v6, 0.0  ;;  %v831_v58 = vsel %vm194_vm0, %v742_v55, 0.0  ;;  %v1793_v6 = vld [vmem:[#allocation3 + $0x1e0] sm:$0xff] }
  0x39   :  { %v826_v51 = vadd.f32 %v825_v49, %v824_v50  ;;  %1302 = vmatpush.xpose.msk.msrb.mxu2 %vm194_vm0, %v1757_v19  ;;  %1316 = vmatpush.xpose.msk.msrb.mxu3 %vm194_vm0, %v1763_v24  ;;  %v1789_v49 = vld [vmem:[#allocation3 + $0x148] sm:$0xff]  ;;  %v843_v57 = vsel %vm194_vm0, %v748_v43, 0.0  ;;  %v178_v43 = vld [vmem:[#allocation3 + $0x180] sm:$0xff] }
  0x3b   :  { %1271 = vmatpush.xpose.msk.msrb.mxu0 %vm194_vm0, %v1710_v34  ;;  %v828_v40 = vadd.f32 %v827_v56, %v826_v51  ;;  %v750_v51 = vmul.f32 %v1710_v34, %v1710_v34 }
  0x3c   :  { %1287 = vmatpush.xpose.msk.msrb.mxu1 %vm194_vm0, %v1755_v15  ;;  %1260 = vmatmul.msk.f32.gmra.mxu3 %vm194_vm0, %v1604_v16  ;;  %v839_v16 = vsel %vm194_vm0, %v746_v27, 0.0 }
  0x3d   :  { %v830_v20 = vadd.f32 %v829_v60, %v828_v40  ;;  %1317 = vmatpush.xpose.msk.msrb.mxu3 %vm194_vm0, %v1793_v6 }
  0x3e   :  { %1213 = vmatmul.msk.f32.gmra.mxu0 %vm194_vm0, %v1475_v11  ;;  %v745_v11 = vmul.f32 %v1550_v45, %v1550_v45 }
  0x3f   :  { %1272 = vmatpush.xpose.msk.msrb.mxu0 %vm194_vm0, %v1732_v53  ;;  %1229 = vmatmul.msk.f32.gmra.mxu1 %vm194_vm0, %v1540_v41  ;;  %v832_v44 = vadd.f32 %v831_v58, %v830_v20  ;;  %v747_v41 = vmul.f32 %v1506_v25, %v1506_v25  ;;  %v752_v58 = vmul.f32 %v1666_v59, %v1666_v59  ;;  %v1821_v20 = vld [vmem:[#allocation3 + $0x140] sm:$0xff] }
  0x40   :  { %1245 = vmatmul.msk.f32.gmra.mxu2 %vm194_vm0, %v1555_v48  ;;  %v837_v7 = vsel %vm194_vm0, %v745_v11, 0.0  ;;  %v1791_v48 = vld [vmem:[#allocation3 + $0x190] sm:$0xff]  ;;  %1288 = vmatpush.xpose.msk.msrb.mxu1 %vm194_vm0, %v1789_v49  ;;  %v1823_v11 = vld [vmem:[#allocation3 + $0x188] sm:$0xff] }
  0x41   :  { %v834_v32 = vadd.f32 %v833_v26, %v832_v44  ;;  %1303 = vmatpush.xpose.msk.msrb.mxu2 %vm194_vm0, %v1791_v48  ;;  %v841_v55 = vsel %vm194_vm0, %v747_v41, 0.0  ;;  %v753_v44 = vmul.f32 %v1645_v46, %v1645_v46 }
  0x43   :  { %1273 = vmatpush.xpose.msk.msrb.mxu0 %vm194_vm0, %v1753_v0  ;;  %v836_v36 = vadd.f32 %v835_v31, %v834_v32  ;;  %v754_v31 = vmul.f32 %v1622_v29, %v1622_v29  ;;  %v851_v32 = vsel %vm194_vm0, %v752_v58, 0.0  ;;  %v761_v58 = vmul.f32 %v1659_v54, %v1659_v54 }
  0x44   :  { %1261 = vmatmul.msk.f32.gmra.mxu3 %vm194_vm0, %v1591_v63  ;;  %v847_v63 = vsel %vm194_vm0, %v750_v51, 0.0  ;;  %1289 = vmatpush.xpose.msk.msrb.mxu1 %vm194_vm0, %v1821_v20 }
  0x45   :  { %v838_v50 = vadd.f32 %v837_v7, %v836_v36  ;;  %1304 = vmatpush.xpose.msk.msrb.mxu2 %vm194_vm0, %v1823_v11  ;;  %v755_v7 = vmul.f32 %v1600_v12, %v1600_v12 }
  0x46   :  { %1214 = vmatmul.msk.f32.gmra.mxu0 %vm194_vm0, %v1491_v18  ;;  %v749_v18 = vmul.f32 %v1732_v53, %v1732_v53 }
  0x47   :  { %1230 = vmatmul.msk.f32.gmra.mxu1 %vm194_vm0, %v1522_v33  ;;  %v840_v56 = vadd.f32 %v839_v16, %v838_v50  ;;  %v751_v33 = vmul.f32 %v1691_v21, %v1691_v21  ;;  %v855_v16 = vsel %vm194_vm0, %v754_v31, 0.0  ;;  %v1853_v50 = vld [vmem:[#allocation3 + $0x1d0] sm:$0xff] }
  0x48   :  { %1246 = vmatmul.msk.f32.gmra.mxu2 %vm194_vm0, %v1531_v37  ;;  %v845_v40 = vsel %vm194_vm0, %v749_v18, 0.0  ;;  %v1825_v37 = vld [vmem:[#allocation3 + $0x1d8] sm:$0xff] }
  0x49   :  { %v842_v60 = vadd.f32 %v841_v55, %v840_v56  ;;  %1318 = vmatpush.xpose.msk.msrb.mxu3 %vm194_vm0, %v1825_v37  ;;  %1305 = vmatpush.xpose.msk.msrb.mxu2 %vm194_vm0, %v178_v43  ;;  %v758_v56 = vmul.f32 %v1755_v15, %v1755_v15 }
  0x4b   :  { %v844_v61 = vadd.f32 %v843_v57, %v842_v60  ;;  %v759_v60 = vmul.f32 %v1715_v42, %v1715_v42 }
  0x4c   :  { %1262 = vmatmul.msk.f32.gmra.mxu3 %vm194_vm0, %v1566_v52  ;;  %v756_v52 = vmul.f32 %v1821_v20, %v1821_v20 }
  0x4d   :  { %v846_v26 = vadd.f32 %v845_v40, %v844_v61  ;;  %1319 = vmatpush.xpose.msk.msrb.mxu3 %vm194_vm0, %v1853_v50  ;;  %v760_v40 = vmul.f32 %v1680_v3, %v1680_v3 }
  0x4e   :  { %1215 = vmatmul.msk.f32.gmra.mxu0 %vm194_vm0, %v1483_v14  ;;  %v849_v14 = vsel %vm194_vm0, %v751_v33, 0.0  ;;  %v859_v51 = vsel %vm194_vm0, %v756_v52, 0.0 }
  0x4f   :  { %1231 = vmatmul.msk.f32.gmra.mxu1 %vm194_vm0, %v1499_v22  ;;  %v848_v27 = vadd.f32 %v847_v63, %v846_v26  ;;  %v853_v22 = vsel %vm194_vm0, %v753_v44, 0.0  ;;  %v187_v63 = vld [vmem:[#allocation3 + $0x1c8] sm:$0xff]  ;;  %v762_v44 = vmul.f32 %v1634_v38, %v1634_v38 }
  0x50   :  { %1247 = vmatmul.msk.f32.gmra.mxu2 %vm194_vm0, %v1511_v28  ;;  %v857_v28 = vsel %vm194_vm0, %v755_v7, 0.0 }
  0x51   :  { %v850_v41 = vadd.f32 %v849_v14, %v848_v27  ;;  %1320 = vmatpush.xpose.msk.msrb.mxu3 %vm194_vm0, %v187_v63  ;;  %v763_v27 = vmul.f32 %v1611_v23, %v1611_v23 }
  0x53   :  { %v852_v36 = vadd.f32 %v851_v32, %v850_v41  ;;  %v871_v32 = vsel %vm194_vm0, %v762_v44, 0.0  ;;  %v186_v41 = vld [vmem:[#allocation3 + $0x1c0] sm:$0xff] }
  0x54   :  { %1263 = vmatmul.msk.f32.gmra.mxu3 %vm194_vm0, %v1550_v45  ;;  %v863_v45 = vsel %vm194_vm0, %v758_v56, 0.0  ;;  %v769_v56 = vmul.f32 %v1678_v62, %v1678_v62 }
  0x55   :  { %v854_v55 = vadd.f32 %v853_v22, %v852_v36  ;;  %1321 = vmatpush.xpose.msk.msrb.mxu3 %vm194_vm0, %v186_v41  ;;  %v765_v22 = vmul.f32 %v1823_v11, %v1823_v11 }
  0x56   :  { %1216 = vmatmul.msk.f32.gmra.mxu0 %vm194_vm0, %v1457_v4  ;;  %v757_v4 = vmul.f32 %v1789_v49, %v1789_v49 }
  0x57   :  { %1232 = vmatmul.msk.f32.gmra.mxu1 %vm194_vm0, %v1467_v8  ;;  %v856_v18 = vadd.f32 %v855_v16, %v854_v55  ;;  %v767_v55 = vmul.f32 %v1757_v19, %v1757_v19 }
  0x58   :  { %1248 = vmatmul.msk.f32.gmra.mxu2 %vm194_vm0, %v1489_v17  ;;  %v861_v8 = vsel %vm194_vm0, %v757_v4, 0.0  ;;  %v865_v17 = vsel %vm194_vm0, %v759_v60, 0.0 }
  0x59   :  { %v858_v57 = vadd.f32 %v857_v28, %v856_v18  ;;  %v877_v28 = vsel %vm194_vm0, %v765_v22, 0.0 }
  0x5b   :  { %v860_v33 = vadd.f32 %v859_v51, %v858_v57  ;;  %v770_v57 = vmul.f32 %v1657_v39, %v1657_v39 }
  0x5c   :  { %1264 = vmatmul.msk.f32.gmra.mxu3 %vm194_vm0, %v1517_v30  ;;  %v764_v30 = vmul.f32 %v178_v43, %v178_v43 }
  0x5d   :  { %v862_v61 = vadd.f32 %v861_v8, %v860_v33  ;;  %v771_v8 = vmul.f32 %v1631_v35, %v1631_v35  ;;  %v885_v33 = vsel %vm194_vm0, %v769_v56, 0.0 }
  0x5e   :  { %1217 = vmatmul.msk.f32.gmra.mxu0 %vm194_vm0, %v1446_v1  ;;  %v867_v1 = vsel %vm194_vm0, %v760_v40, 0.0  ;;  %v875_v16 = vsel %vm194_vm0, %v764_v30, 0.0 }
  0x5f   :  { %1233 = vmatmul.msk.f32.gmra.mxu1 %vm194_vm0, %v1459_v5  ;;  %v864_v26 = vadd.f32 %v863_v45, %v862_v61  ;;  %v869_v5 = vsel %vm194_vm0, %v761_v58, 0.0  ;;  %v772_v45 = vmul.f32 %v186_v41, %v186_v41  ;;  %v889_v58 = vsel %vm194_vm0, %v771_v8, 0.0 }
  0x60   :  { %1249 = vmatmul.msk.f32.gmra.mxu2 %vm194_vm0, %v1471_v10  ;;  %v873_v10 = vsel %vm194_vm0, %v763_v27, 0.0 }
  0x61   :  { %v866_v14 = vadd.f32 %v865_v17, %v864_v26  ;;  %v773_v17 = vmul.f32 %v187_v63, %v187_v63  ;;  %v774_v26 = vmul.f32 %v1853_v50, %v1853_v50  ;;  %v891_v44 = vsel %vm194_vm0, %v772_v45, 0.0 }
  0x63   :  { %v868_v31 = vadd.f32 %v867_v1, %v866_v14  ;;  %v893_v27 = vsel %vm194_vm0, %v773_v17, 0.0 }
  0x64   :  { %1265 = vmatmul.msk.f32.gmra.mxu3 %vm194_vm0, %v1506_v25 }
  0x65   :  { %v870_v7 = vadd.f32 %v869_v5, %v868_v31 }
  0x66   :  { %1274 = vmatmul.msk.f32.vlgmr.msrb.gmra.mxu0 %vm194_vm0, %v1753_v0  ;;  %v766_v0 = vmul.f32 %v1791_v48, %v1791_v48 }
  0x67   :  { %1290 = vmatmul.msk.f32.vlgmr.msrb.gmra.mxu1 %vm194_vm0, %v1821_v20  ;;  %v872_v36 = vadd.f32 %v871_v32, %v870_v7  ;;  %v768_v20 = vmul.f32 %v1717_v13, %v1717_v13 }
  0x68   :  { %1306 = vmatmul.msk.f32.vlgmr.msrb.gmra.mxu2 %vm194_vm0, %v178_v43  ;;  %v879_v18 = vsel %vm194_vm0, %v766_v0, 0.0  ;;  %v881_v43 = vsel %vm194_vm0, %v767_v55, 0.0 }
  0x69   :  { %v874_v52 = vadd.f32 %v873_v10, %v872_v36  ;;  %v883_v60 = vsel %vm194_vm0, %v768_v20, 0.0 }
  0x6b   :  { %v876_v4 = vadd.f32 %v875_v16, %v874_v52 }
  0x6c   :  { %1322 = vmatmul.msk.f32.vlgmr.msrb.gmra.mxu3 %vm194_vm0, %v186_v41 }
  0x6d   :  { %v878_v25 = vadd.f32 %v877_v28, %v876_v4 }
  0x6e   :  { %1275 = vmatmul.msk.f32.gmra.mxu0 %vm194_vm0, %v1732_v53 }
  0x6f   :  { %1291 = vmatmul.msk.f32.gmra.mxu1 %vm194_vm0, %v1789_v49  ;;  %v880_v51 = vadd.f32 %v879_v18, %v878_v25  ;;  %v887_v49 = vsel %vm194_vm0, %v770_v57, 0.0 }
  0x70   :  { %1307 = vmatmul.msk.f32.gmra.mxu2 %vm194_vm0, %v1823_v11 }
  0x71   :  { %v882_v53 = vadd.f32 %v881_v43, %v880_v51 }
  0x73   :  { %v884_v40 = vadd.f32 %v883_v60, %v882_v53 }
  0x74   :  { %1323 = vmatmul.msk.f32.gmra.mxu3 %vm194_vm0, %v187_v63 }
  0x75   :  { %v886_v61 = vadd.f32 %v885_v33, %v884_v40 }
  0x76   :  { %1276 = vmatmul.msk.f32.gmra.mxu0 %vm194_vm0, %v1710_v34 }
  0x77   :  { %1292 = vmatmul.msk.f32.gmra.mxu1 %vm194_vm0, %v1755_v15  ;;  %v888_v11 = vadd.f32 %v887_v49, %v886_v61  ;;  %v895_v15 = vsel %vm194_vm0, %v774_v26, 0.0 }
  0x78   :  { %1308 = vmatmul.msk.f32.gmra.mxu2 %vm194_vm0, %v1791_v48  ;;  %v61_v48 = vlaneseq }
  0x79   :  { %v890_v1 = vadd.f32 %v889_v58, %v888_v11 }
  0x7b   :  { %v892_v5 = vadd.f32 %v891_v44, %v890_v1 }
  0x7c   :  { %v52_v34 = vpop.xlane.xlu0 %51  ;;  %1324 = vmatmul.msk.f32.gmra.mxu3 %vm194_vm0, %v1853_v50  ;;  %v1415_v50 = vmov 0.0  }
  0x7d   :  { %v53_v14 = vsub.f32 %v1451_v2, %v52_v34  ;;  %v894_v31 = vadd.f32 %v893_v27, %v892_v5 }
  0x7e   :  { %1277 = vmatmul.msk.f32.gmra.mxu0 %vm194_vm0, %v1691_v21 }
  0x7f   :  { %v54_v63 = vmul.f32 1.442695, %v53_v14  ;;  %1293 = vmatmul.msk.f32.gmra.mxu1 %vm194_vm0, %v1715_v42  ;;  %v1950_v32 = vadd.f32 %v895_v15, %v894_v31  ;;  %v62_v42 = vand.u32 127, %v61_v48 }
  0x80   :  { %1309 = vmatmul.msk.f32.gmra.mxu2 %vm194_vm0, %v1757_v19  ;;  %v1358_v19 = vld [vmem:[%s2203_s2] ss:$0 sm:$0xff] }
  0x81   :  { %1359 = vpow2.f32 %v54_v63 }
  0x84   :  { %1325 = vmatmul.msk.f32.gmra.mxu3 %vm194_vm0, %v1825_v37 }
  0x86   :  { %1278 = vmatmul.msk.f32.gmra.mxu0 %vm194_vm0, %v1666_v59 }
  0x87   :  { %v1360_v2 = vpop.eup %1359  ;;  %1294 = vmatmul.msk.f32.gmra.mxu1 %vm194_vm0, %v1680_v3 }
  0x88   :  { %v56_v21 = vsel %vm49_vm1, %v1360_v2, 0.0  ;;  %1310 = vmatmul.msk.f32.gmra.mxu2 %vm194_vm0, %v1717_v13 }
  0x89   :  { %57 = vadd.xlane.f32.xlu1 %v56_v21 }
  0x8c   :  { %1326 = vmatmul.msk.f32.gmra.mxu3 %vm194_vm0, %v1793_v6 }
  0x8e   :  { %1279 = vmatmul.msk.f32.gmra.mxu0 %vm194_vm0, %v1645_v46 }
  0x8f   :  { %v65_v59 = vpop.permute.xlu0 %64  ;;  %1295 = vmatmul.msk.f32.gmra.mxu1 %vm194_vm0, %v1659_v54 }
  0x90   :  { %vm66_vm2 = vcmp.eq.s32.totalorder %v62_v42, %v65_v59  ;;  %1311 = vmatmul.msk.f32.gmra.mxu2 %vm194_vm0, %v1678_v62 }
  0x91   :  { %v1199_v30 = vsel %vm66_vm2, 1.0, %v1415_v50 }
  0x92   :  { %v69_v3 = vmul.f32 %v1199_v30, %v53_v14  ;;  %v79_v41 = vmul.f32 %v1358_v19, %v1199_v30 }
  0x94   :  { %v70_v13 = vsel %vm49_vm1, %v69_v3, 0.0  ;;  %v80_v7 = vsel %vm49_vm1, %v79_v41, 0.0  ;;  %1327 = vmatmul.msk.f32.gmra.mxu3 %vm194_vm0, %v1763_v24 }
  0x95   :  { %71 = vadd.xlane.f32.xlu1 %v70_v13  ;;  %81 = vadd.xlane.f32.xlu2 %v80_v7 }
  0x96   :  { %1280 = vmatmul.msk.f32.gmra.mxu0 %vm194_vm0, %v1622_v29 }
  0x97   :  { %1296 = vmatmul.msk.f32.gmra.mxu1 %vm194_vm0, %v1634_v38 }
  0x98   :  { %1312 = vmatmul.msk.f32.gmra.mxu2 %vm194_vm0, %v1657_v39 }
  0x9c   :  { %1328 = vmatmul.msk.f32.gmra.mxu3 %vm194_vm0, %v1723_v47 }
  0x9e   :  { %1281 = vmatmul.msk.f32.gmra.mxu0 %vm194_vm0, %v1600_v12 }
  0x9f   :  { %1297 = vmatmul.msk.f32.gmra.mxu1 %vm194_vm0, %v1611_v23 }
  0xa0   :  { %1313 = vmatmul.msk.f32.gmra.mxu2 %vm194_vm0, %v1631_v35 }
  0xa3   :  { %v236_v29 = vpop.f32.mrf.mxu0 }
  0xa4   :  { %v301_v38 = vpop.f32.mrf.mxu1  ;;  %1329 = vmatmul.msk.f32.gmra.mxu3 %vm194_vm0, %v1689_v9  ;;  %v918_v43 = vmul.f32 %v236_v29, %v236_v29 }
  0xa5   :  { %v926_v31 = vmul.f32 %v301_v38, %v301_v38 }
  0xa6   :  { %v982_v53 = vsel %vm194_vm0, %v918_v43, 0.0 }
  0xa7   :  { %v997_v30 = vsel %vm194_vm0, %v926_v31, 0.0 }
  0xab   :  { %v239_v46 = vpop.f32.mrf.mxu0  ;;  %v1996_v39 = vpop.f32.mrf.mxu2 }
  0xac   :  { %v304_v54 = vpop.f32.mrf.mxu1  ;;  %v919_v20 = vmul.f32 %v239_v46, %v239_v46 }
  0xad   :  { %v927_v19 = vmul.f32 %v304_v54, %v304_v54 }
  0xae   :  { %v983_v57 = vsel %vm194_vm0, %v919_v20, 0.0 }
  0xaf   :  { %v1998_v12 = vpop.f32.mrf.mxu3  ;;  %v984_v40 = vadd.f32 %v983_v57, %v982_v53  ;;  %v999_v7 = vsel %vm194_vm0, %v927_v19, 0.0 }
  0xb3   :  { %v242_v62 = vpop.f32.mrf.mxu0  ;;  %v2000_v23 = vpop.f32.mrf.mxu2 }
  0xb4   :  { %v307_v10 = vpop.f32.mrf.mxu1  ;;  %v920_v51 = vmul.f32 %v242_v62, %v242_v62 }
  0xb5   :  { %v928_v3 = vmul.f32 %v307_v10, %v307_v10 }
  0xb6   :  { %v985_v8 = vsel %vm194_vm0, %v920_v51, 0.0 }
  0xb7   :  { %v2002_v36 = vpop.f32.mrf.mxu3  ;;  %v986_v58 = vadd.f32 %v985_v8, %v984_v40  ;;  %v1001_v38 = vsel %vm194_vm0, %v928_v3, 0.0 }
  0xbb   :  { %v245_v22 = vpop.f32.mrf.mxu0  ;;  %v2004_v35 = vpop.f32.mrf.mxu2 }
  0xbc   :  { %v310_v0 = vpop.f32.mrf.mxu1  ;;  %v921_v60 = vmul.f32 %v245_v22, %v245_v22 }
  0xbd   :  { %v929_v29 = vmul.f32 %v310_v0, %v310_v0 }
  0xbe   :  { %v987_v45 = vsel %vm194_vm0, %v921_v60, 0.0 }
  0xbf   :  { %v2006_v52 = vpop.f32.mrf.mxu3  ;;  %v988_v34 = vadd.f32 %v987_v45, %v986_v58  ;;  %v1003_v20 = vsel %vm194_vm0, %v929_v29, 0.0  ;;  %v935_v58 = vmul.f32 %v2000_v23, %v2000_v23 }
  0xc3   :  { %v248_v16 = vpop.f32.mrf.mxu0  ;;  %v2008_v28 = vpop.f32.mrf.mxu2 }
  0xc4   :  { %v313_v55 = vpop.f32.mrf.mxu1  ;;  %v922_v33 = vmul.f32 %v248_v16, %v248_v16 }
  0xc5   :  { %v930_v22 = vmul.f32 %v313_v55, %v313_v55  ;;  %v934_v55 = vmul.f32 %v1996_v39, %v1996_v39  ;;  %v1015_v39 = vsel %vm194_vm0, %v935_v58, 0.0 }
  0xc6   :  { %v989_v26 = vsel %vm194_vm0, %v922_v33, 0.0 }
  0xc7   :  { %v2010_v18 = vpop.f32.mrf.mxu3  ;;  %v990_v27 = vadd.f32 %v989_v26, %v988_v34  ;;  %v1005_v51 = vsel %vm194_vm0, %v930_v22, 0.0  ;;  %v936_v34 = vmul.f32 %v2004_v35, %v2004_v35 }
  0xcb   :  { %v251_v4 = vpop.f32.mrf.mxu0  ;;  %v2012_v56 = vpop.f32.mrf.mxu2 }
  0xcc   :  { %v316_v25 = vpop.f32.mrf.mxu1  ;;  %v923_v61 = vmul.f32 %v251_v4, %v251_v4  ;;  %v938_v23 = vmul.f32 %v2012_v56, %v2012_v56 }
  0xcd   :  { %v931_v43 = vmul.f32 %v316_v25, %v316_v25 }
  0xce   :  { %v991_v14 = vsel %vm194_vm0, %v923_v61, 0.0 }
  0xcf   :  { %v2021_v1 = vpop.f32.mrf.mxu3  ;;  %v992_v15 = vadd.f32 %v991_v14, %v990_v27  ;;  %v1007_v0 = vsel %vm194_vm0, %v931_v43, 0.0  ;;  %v937_v27 = vmul.f32 %v2008_v28, %v2008_v28  ;;  %v1021_v28 = vsel %vm194_vm0, %v938_v23, 0.0 }
  0xd1   :  { %v1019_v35 = vsel %vm194_vm0, %v937_v27, 0.0 }
  0xd3   :  { %v254_v49 = vpop.f32.mrf.mxu0  ;;  %v2018_v11 = vpop.f32.mrf.mxu2 }
  0xd4   :  { %v319_v17 = vpop.f32.mrf.mxu1  ;;  %v924_v44 = vmul.f32 %v254_v49, %v254_v49 }
  0xd5   :  { %v932_v57 = vmul.f32 %v319_v17, %v319_v17 }
  0xd6   :  { %v993_v5 = vsel %vm194_vm0, %v924_v44, 0.0  ;;  %v1013_v44 = vsel %vm194_vm0, %v934_v55, 0.0 }
  0xd7   :  { %v994_v21 = vadd.f32 %v993_v5, %v992_v15  ;;  %v2027_v13 = vpop.f32.mrf.mxu3  ;;  %v1009_v49 = vsel %vm194_vm0, %v932_v57, 0.0 }
  0xdb   :  { %v257_v63 = vpop.f32.mrf.mxu0  ;;  %v384_v42 = vpop.f32.mrf.mxu2 }
  0xdc   :  { %v925_v2 = vmul.f32 %v257_v63, %v257_v63  ;;  %v322_v48 = vpop.f32.mrf.mxu1  ;;  %v1017_v63 = vsel %vm194_vm0, %v936_v34, 0.0 }
  0xdd   :  { %v933_v60 = vmul.f32 %v322_v48, %v322_v48  ;;  %v939_v48 = vmul.f32 %v2018_v11, %v2018_v11 }
  0xde   :  { %v995_v59 = vsel %vm194_vm0, %v925_v2, 0.0 }
  0xdf   :  { %v996_v50 = vadd.f32 %v995_v59, %v994_v21  ;;  %v449_v40 = vpop.f32.mrf.mxu3  ;;  %v1011_v45 = vsel %vm194_vm0, %v933_v60, 0.0  ;;  %v940_v59 = vmul.f32 %v384_v42, %v384_v42  ;;  %v943_v42 = vmul.f32 %v2002_v36, %v2002_v36 }
  0xe0   :  { %v945_v60 = vmul.f32 %v2010_v18, %v2010_v18  ;;  %v948_v34 = vmul.f32 %v449_v40, %v449_v40 }
  0xe1   :  { %v998_v41 = vadd.f32 %v997_v30, %v996_v50  ;;  %v1031_v57 = vsel %vm194_vm0, %v943_v42, 0.0 }
  0xe3   :  { %v1000_v46 = vadd.f32 %v999_v7, %v998_v41  ;;  %v2030_v62 = vpop.f32.mrf.mxu0  ;;  %v387_v4 = vpop.f32.mrf.mxu2  ;;  %v1023_v41 = vsel %vm194_vm0, %v939_v48, 0.0 }
  0xe4   :  { %v2033_v54 = vpop.f32.mrf.mxu1  ;;  %v941_v50 = vmul.f32 %v387_v4, %v387_v4 }
  0xe5   :  { %v1002_v16 = vadd.f32 %v1001_v38, %v1000_v46  ;;  %v942_v46 = vmul.f32 %v1998_v12, %v1998_v12  ;;  %v1025_v38 = vsel %vm194_vm0, %v940_v59, 0.0 }
  0xe6   :  { %v1027_v11 = vsel %vm194_vm0, %v941_v50, 0.0 }
  0xe7   :  { %v1004_v10 = vadd.f32 %v1003_v20, %v1002_v16  ;;  %v452_v21 = vpop.f32.mrf.mxu3  ;;  %v1029_v43 = vsel %vm194_vm0, %v942_v46, 0.0 }
  0xe9   :  { %v1006_v53 = vadd.f32 %v1005_v51, %v1004_v10  ;;  %v944_v10 = vmul.f32 %v2006_v52, %v2006_v52  ;;  %v1035_v52 = vsel %vm194_vm0, %v945_v60, 0.0 }
  0xeb   :  { %v1008_v8 = vadd.f32 %v1007_v0, %v1006_v53  ;;  %v2038_v33 = vpop.f32.mrf.mxu0  ;;  %v2048_v26 = vpop.f32.mrf.mxu2  ;;  %v946_v53 = vmul.f32 %v2021_v1, %v2021_v1  ;;  %v1033_v55 = vsel %vm194_vm0, %v944_v10, 0.0 }
  0xec   :  { %v2044_v61 = vpop.f32.mrf.mxu1 }
  0xed   :  { %v1010_v25 = vadd.f32 %v1009_v49, %v1008_v8  ;;  %v1037_v18 = vsel %vm194_vm0, %v946_v53, 0.0  ;;  %v775_v53 = vmul.f32 %v1825_v37, %v1825_v37 }
  0xef   :  { %v1012_v17 = vadd.f32 %v1011_v45, %v1010_v25  ;;  %v2078_v20 = vpop.f32.mrf.mxu3  ;;  %v947_v25 = vmul.f32 %v2027_v13, %v2027_v13  ;;  %v897_v37 = vsel %vm194_vm0, %v775_v53, 0.0 }
  0xf1   :  { %v1014_v14 = vadd.f32 %v1013_v44, %v1012_v17  ;;  %v1039_v23 = vsel %vm194_vm0, %v947_v25, 0.0 }
  0xf3   :  { %v1016_v5 = vadd.f32 %v1015_v39, %v1014_v14  ;;  %v2056_v15 = vpop.f32.mrf.mxu0  ;;  %v2067_v3 = vpop.f32.mrf.mxu2  ;;  %v949_v39 = vmul.f32 %v452_v21, %v452_v21 }
  0xf4   :  { %v2061_v2 = vpop.f32.mrf.mxu1 }
  0xf5   :  { %v1018_v31 = vadd.f32 %v1017_v63, %v1016_v5  ;;  %v1043_v40 = vsel %vm194_vm0, %v949_v39, 0.0 }
  0xf7   :  { %v1020_v19 = vadd.f32 %v1019_v35, %v1018_v31  ;;  %v2098_v63 = vpop.f32.mrf.mxu3  ;;  %v950_v35 = vmul.f32 %v2030_v62, %v2030_v62 }
  0xf9   :  { %v1022_v30 = vadd.f32 %v1021_v28, %v1020_v19  ;;  %v1041_v28 = vsel %vm194_vm0, %v948_v34, 0.0  ;;  %v1045_v62 = vsel %vm194_vm0, %v950_v35, 0.0  ;;  %v959_v35 = vmul.f32 %v2044_v61, %v2044_v61 }
  0xfb   :  { %v1024_v56 = vadd.f32 %v1023_v41, %v1022_v30  ;;  %v505_v7 = vpop.f32.mrf.mxu0  ;;  %v2088_v8 = vpop.f32.mrf.mxu2  ;;  %v951_v30 = vmul.f32 %v2038_v33, %v2038_v33 }
  0xfc   :  { %v58_v29 = vpop.xlane.xlu1 %57  ;;  %v2074_v16 = vpop.f32.mrf.mxu1  ;;  %v953_v42 = vmul.f32 %v505_v7, %v505_v7 }
  0xfd   :  { %1361 = vlog2.f32 %v58_v29  ;;  %v1026_v22 = vadd.f32 %v1025_v38, %v1024_v56  ;;  %v952_v29 = vmul.f32 %v2056_v15, %v2056_v15  ;;  %v961_v61 = vmul.f32 %v2074_v16, %v2074_v16 }
  0xfe   :  { %v1051_v15 = vsel %vm194_vm0, %v953_v42, 0.0 }
  0xff   :  { %v1028_v4 = vadd.f32 %v1027_v11, %v1026_v22  ;;  %v1047_v22 = vsel %vm194_vm0, %v951_v30, 0.0  ;;  %v2114_v10 = vpop.f32.mrf.mxu3  ;;  %v1063_v30 = vsel %vm194_vm0, %v959_v35, 0.0  ;;  %v1067_v42 = vsel %vm194_vm0, %v961_v61, 0.0 }
 0x100   :  { %v974_v35 = vmul.f32 %v2078_v20, %v2078_v20 }
 0x101   :  { %v1030_v12 = vadd.f32 %v1029_v43, %v1028_v4 }
 0x103   :  { %v1362_v51 = vpop.eup %1361  ;;  %v1032_v0 = vadd.f32 %v1031_v57, %v1030_v12  ;;  %v508_v36 = vpop.f32.mrf.mxu0  ;;  %v1049_v12 = vsel %vm194_vm0, %v952_v29, 0.0 }
 0x104   :  { %v60_v49 = vmul.f32 0.6931472, %v1362_v51  ;;  %v2094_v58 = vpop.f32.mrf.mxu1  ;;  %v2105_v50 = vpop.f32.mrf.mxu2  ;;  %v954_v51 = vmul.f32 %v508_v36, %v508_v36 }
 0x105   :  { %v1034_v45 = vadd.f32 %v1033_v55, %v1032_v0 }
 0x107   :  { %v1036_v17 = vadd.f32 %v1035_v52, %v1034_v45  ;;  %v776_v45 = vmul.f32 %v1793_v6, %v1793_v6  ;;  %v1053_v52 = vsel %vm194_vm0, %v954_v51, 0.0  ;;  %v958_v6 = vmul.f32 %v2033_v54, %v2033_v54 }
 0x108   :  { %v72_v1 = vpop.xlane.xlu1 %71  ;;  %v82_v44 = vpop.xlane.xlu2 %81 }
 0x109   :  { %v73_v14 = vsub.f32 %v72_v1, %v60_v49  ;;  %v101_v27 = vsel %vm86_vm3, %v82_v44, 0.0  ;;  %v1038_v5 = vadd.f32 %v1037_v18, %v1036_v17  ;;  %v777_v18 = vmul.f32 %v1763_v24, %v1763_v24 }
 0x10a   :  { %102 = vadd.xlane.f32.xlu1 %v101_v27  ;;  %v898_v24 = vadd.f32 %v897_v37, %v1950_v32  ;;  %v960_v32 = vmul.f32 %v2061_v2, %v2061_v2 }
 0x10b   :  { %v74_v31 = vmul.f32 1.442695, %v73_v14  ;;  %v84_v13 = vsub.f32 0.0, %v73_v14  ;;  %v1040_v48 = vadd.f32 %v1039_v23, %v1038_v5  ;;  %v511_v19 = vpop.f32.mrf.mxu0  ;;  %v899_v14 = vsel %vm194_vm0, %v776_v45, 0.0  ;;  %v2134_v23 = vpop.f32.mrf.mxu3 }
 0x10c   :  { %v576_v38 = vpop.f32.mrf.mxu1  ;;  %v955_v0 = vmul.f32 %v511_v19, %v511_v19  ;;  %v2120_v49 = vpop.f32.mrf.mxu2  ;;  %v900_v54 = vadd.f32 %v899_v14, %v898_v24  ;;  %v1065_v29 = vsel %vm194_vm0, %v960_v32, 0.0  ;;  %v976_v32 = vmul.f32 %v2114_v10, %v2114_v10 }
 0x10d   :  { %1363 = vpow2.f32 %v74_v31  ;;  %v85_v21 = vmul.f32 %v84_v13, %v82_v44  ;;  %v1042_v59 = vadd.f32 %v1041_v28, %v1040_v48  ;;  %v778_v31 = vmul.f32 %v1723_v47, %v1723_v47 }
 0x10e   :  { %v1055_v17 = vsel %vm194_vm0, %v955_v0, 0.0  ;;  %v901_v13 = vsel %vm194_vm0, %v777_v18, 0.0  ;;  %v779_v28 = vmul.f32 %v1689_v9, %v1689_v9  ;;  %v962_v9 = vmul.f32 %v2094_v58, %v2094_v58 }
 0x10f   :  { %v87_v41 = vsel %vm86_vm3, %v85_v21, 0.0  ;;  %v1044_v56 = vadd.f32 %v1043_v40, %v1042_v59  ;;  %v1061_v40 = vsel %vm194_vm0, %v958_v6, 0.0  ;;  %v902_v47 = vadd.f32 %v901_v13, %v900_v54 }
 0x110   :  { %88 = vadd.xlane.f32.xlu2 %v87_v41  ;;  %v903_v41 = vsel %vm194_vm0, %v778_v31, 0.0  ;;  %v1069_v16 = vsel %vm194_vm0, %v962_v9, 0.0  ;;  %v975_v54 = vmul.f32 %v2098_v63, %v2098_v63  ;;  %v977_v20 = vmul.f32 %v2134_v23, %v2134_v23 }
 0x111   :  { %v1046_v46 = vadd.f32 %v1045_v62, %v1044_v56  ;;  %v904_v62 = vadd.f32 %v903_v41, %v902_v47 }
 0x112   :  { %v1099_v63 = vsel %vm194_vm0, %v977_v20, 0.0 }
 0x113   :  { %v1364_v11 = vpop.eup %1363  ;;  %v1048_v4 = vadd.f32 %v1047_v22, %v1046_v46  ;;  %v514_v43 = vpop.f32.mrf.mxu0  ;;  %v905_v46 = vsel %vm194_vm0, %v779_v28, 0.0 }
 0x114   :  { %v115_v33 = vsub.f32 1.0, %v1364_v11  ;;  %v956_v25 = vmul.f32 %v514_v43, %v514_v43  ;;  %v579_v34 = vpop.f32.mrf.mxu1  ;;  %v641_v59 = vpop.f32.mrf.mxu2  ;;  %v906_v22 = vadd.f32 %v905_v46, %v904_v62 }
 0x115   :  { %v1050_v57 = vadd.f32 %v1049_v12, %v1048_v4  ;;  %v963_v4 = vmul.f32 %v576_v38, %v576_v38  ;;  %v964_v12 = vmul.f32 %v579_v34, %v579_v34  ;;  %v971_v6 = vmul.f32 %v641_v59, %v641_v59 }
 0x116   :  { %v116_v60 = vmul.f32 %v115_v33, %v115_v33  ;;  %v1057_v39 = vsel %vm194_vm0, %v956_v25, 0.0  ;;  %v703_v33 = vpop.f32.mrf.mxu3  ;;  %907 = vadd.xlane.f32.xlu1 %v906_v22  ;;  %v968_v25 = vmul.f32 %v2088_v8, %v2088_v8  ;;  %v1095_v59 = vsel %vm194_vm0, %v975_v54, 0.0 }
 0x117   :  { %v1052_v55 = vadd.f32 %v1051_v15, %v1050_v57  ;;  %v966_v15 = vmul.f32 %v2048_v26, %v2048_v26  ;;  %v1073_v0 = vsel %vm194_vm0, %v964_v12, 0.0  ;;  %v969_v26 = vmul.f32 %v2105_v50, %v2105_v50 }
 0x118   :  { %v117_v7 = vsel %vm86_vm3, %v116_v60, 0.0  ;;  %v1071_v60 = vsel %vm194_vm0, %v963_v4, 0.0  ;;  %v1087_v31 = vsel %vm194_vm0, %v971_v6, 0.0  ;;  %v978_v61 = vmul.f32 %v703_v33, %v703_v33 }
 0x119   :  { %118 = vadd.xlane.f32.xlu2 %v117_v7  ;;  %v1054_v36 = vadd.f32 %v1053_v52, %v1052_v55  ;;  %v967_v7 = vmul.f32 %v2067_v3, %v2067_v3  ;;  %v1077_v52 = vsel %vm194_vm0, %v966_v15, 0.0  ;;  %v1083_v14 = vsel %vm194_vm0, %v969_v26, 0.0 }
 0x11a   :  { %v1101_v9 = vsel %vm194_vm0, %v978_v61, 0.0 }
 0x11b   :  { %v1056_v1 = vadd.f32 %v1055_v17, %v1054_v36  ;;  %v517_v44 = vpop.f32.mrf.mxu0  ;;  %v1079_v37 = vsel %vm194_vm0, %v967_v7, 0.0 }
 0x11c   :  { %v957_v27 = vmul.f32 %v517_v44, %v517_v44  ;;  %v582_v11 = vpop.f32.mrf.mxu1  ;;  %v644_v58 = vpop.f32.mrf.mxu2  ;;  %v970_v44 = vmul.f32 %v2120_v49, %v2120_v49 }
 0x11d   :  { %v1058_v5 = vadd.f32 %v1057_v39, %v1056_v1  ;;  %v965_v51 = vmul.f32 %v582_v11, %v582_v11  ;;  %v1081_v1 = vsel %vm194_vm0, %v968_v25, 0.0 }
 0x11e   :  { %v1059_v48 = vsel %vm194_vm0, %v957_v27, 0.0  ;;  %v706_v18 = vpop.f32.mrf.mxu3  ;;  %v1085_v8 = vsel %vm194_vm0, %v970_v44, 0.0  ;;  %v972_v27 = vmul.f32 %v644_v58, %v644_v58 }
 0x11f   :  { %v1060_v19 = vadd.f32 %v1059_v48, %v1058_v5  ;;  %v1075_v55 = vsel %vm194_vm0, %v965_v51, 0.0  ;;  %v979_v62 = vmul.f32 %v706_v18, %v706_v18 }
 0x120   :  { %v1089_v49 = vsel %vm194_vm0, %v972_v27, 0.0 }
 0x121   :  { %v1062_v21 = vadd.f32 %v1061_v40, %v1060_v19  ;;  %v1093_v40 = vsel %vm194_vm0, %v974_v35, 0.0  ;;  %v1103_v11 = vsel %vm194_vm0, %v979_v62, 0.0 }
 0x123   :  { %v1064_v56 = vadd.f32 %v1063_v30, %v1062_v21  ;;  %v1097_v30 = vsel %vm194_vm0, %v976_v32, 0.0 }
 0x124   :  { %v647_v34 = vpop.f32.mrf.mxu2 }
 0x125   :  { %v1066_v2 = vadd.f32 %v1065_v29, %v1064_v56  ;;  %v973_v5 = vmul.f32 %v647_v34, %v647_v34 }
 0x126   :  { %v709_v13 = vpop.f32.mrf.mxu3 }
 0x127   :  { %v1068_v43 = vadd.f32 %v1067_v42, %v1066_v2  ;;  %v1091_v48 = vsel %vm194_vm0, %v973_v5, 0.0  ;;  %v980_v46 = vmul.f32 %v709_v13, %v709_v13 }
 0x129   :  { %v1070_v57 = vadd.f32 %v1069_v16, %v1068_v43  ;;  %v1105_v23 = vsel %vm194_vm0, %v980_v46, 0.0 }
 0x12b   :  { %v1072_v53 = vadd.f32 %v1071_v60, %v1070_v57 }
 0x12d   :  { %v1074_v38 = vadd.f32 %v1073_v0, %v1072_v53 }
 0x12e   :  { %v712_v56 = vpop.f32.mrf.mxu3 }
 0x12f   :  { %v1076_v45 = vadd.f32 %v1075_v55, %v1074_v38  ;;  %v981_v10 = vmul.f32 %v712_v56, %v712_v56 }
 0x131   :  { %v1078_v36 = vadd.f32 %v1077_v52, %v1076_v45  ;;  %v1107_v42 = vsel %vm194_vm0, %v981_v10, 0.0 }
 0x133   :  { %v1080_v17 = vadd.f32 %v1079_v37, %v1078_v36 }
 0x135   :  { %v1082_v3 = vadd.f32 %v1081_v1, %v1080_v17 }
 0x137   :  { %v1084_v39 = vadd.f32 %v1083_v14, %v1082_v3 }
 0x139   :  { %v1086_v24 = vadd.f32 %v1085_v8, %v1084_v39  ;;  %v1416_v8 = vmov 8.0  }
 0x13a   :  { %1365 = vrcp.f32 %v1416_v8 }
 0x13b   :  { %v1088_v50 = vadd.f32 %v1087_v31, %v1086_v24 }
 0x13d   :  { %v1090_v19 = vadd.f32 %v1089_v49, %v1088_v50 }
 0x13f   :  { %v1092_v28 = vadd.f32 %v1091_v48, %v1090_v19 }
 0x140   :  { %v1366_v27 = vpop.eup %1365 }
 0x141   :  { %v1094_v21 = vadd.f32 %v1093_v40, %v1092_v28  ;;  %v1147_v24 = vmul.f32 8.0, %v1366_v27  ;;  %vm1151_vm7 = vweird.f32 %v1366_v27 }
 0x143   :  { %v1096_v47 = vadd.f32 %v1095_v59, %v1094_v21  ;;  %v1148_v13 = vsub.f32 1.0, %v1147_v24 }
 0x145   :  { %v1098_v41 = vadd.f32 %v1097_v30, %v1096_v47  ;;  %v1149_v54 = vmul.f32 %v1366_v27, %v1148_v13 }
 0x147   :  { %v1100_v29 = vadd.f32 %v1099_v63, %v1098_v41  ;;  %v1150_v47 = vadd.f32 %v1366_v27, %v1149_v54 }
 0x149   :  { %v1102_v2 = vadd.f32 %v1101_v9, %v1100_v29  ;;  %v1152_v63 = vsel %vm1151_vm7, %v1366_v27, %v1150_v47 }
 0x14b   :  { %v1104_v22 = vadd.f32 %v1103_v11, %v1102_v2 }
 0x14d   :  { %v1106_v4 = vadd.f32 %v1105_v23, %v1104_v22 }
 0x14f   :  { %v1108_v43 = vadd.f32 %v1107_v42, %v1106_v4 }
 0x151   :  { %1109 = vadd.xlane.f32.xlu2 %v1108_v43 }
 0x17d   :  { %v103_v33 = vpop.xlane.xlu1 %102 }
 0x17e   :  { %v104_v16 = vrot.slane %v103_v33, 4 }
 0x180   :  { %v105_v12 = vadd.f32 %v104_v16, %v103_v33 }
 0x182   :  { %v106_v51 = vrot.slane %v105_v12, 2 }
 0x183   :  { %v89_v57 = vpop.xlane.xlu2 %88 }
 0x184   :  { %v90_v60 = vrot.slane %v89_v57, 4  ;;  %v107_v53 = vadd.f32 %v106_v51, %v105_v12 }
 0x186   :  { %v91_v58 = vadd.f32 %v90_v60, %v89_v57  ;;  %v108_v0 = vrot.slane %v107_v53, 1 }
 0x188   :  { %v92_v15 = vrot.slane %v91_v58, 2  ;;  %v109_v45 = vadd.f32 %v108_v0, %v107_v53 }
 0x189   :  { %v908_v1 = vpop.xlane.xlu1 %907 }
 0x18a   :  { %v93_v55 = vadd.f32 %v92_v15, %v91_v58  ;;  %v909_v44 = vrot.slane %v908_v1, 4 }
 0x18c   :  { %v94_v38 = vrot.slane %v93_v55, 1  ;;  %v119_v7 = vpop.xlane.xlu2 %118  ;;  %v910_v3 = vadd.f32 %v909_v44, %v908_v1 }
 0x18d   :  { %v120_v52 = vrot.slane %v119_v7, 4 }
 0x18e   :  { %v95_v25 = vadd.f32 %v94_v38, %v93_v55  ;;  %v911_v34 = vrot.slane %v910_v3, 2 }
 0x18f   :  { %v121_v36 = vadd.f32 %v120_v52, %v119_v7 }
 0x190   :  { %1334 = vpush %v95_v25  ;;  %v912_v14 = vadd.f32 %v911_v34, %v910_v3 }
 0x191   :  { %1336 = vpush %v109_v45  ;;  %v122_v18 = vrot.slane %v121_v36, 2 }
 0x192   :  { %v913_v6 = vrot.slane %v912_v14, 1 }
 0x193   :  { %v123_v37 = vadd.f32 %v122_v18, %v121_v36 }
 0x194   :  { %v914_v39 = vadd.f32 %v913_v6, %v912_v14 }
 0x195   :  { %v124_v26 = vrot.slane %v123_v37, 1 }
 0x197   :  { %v125_v17 = vadd.f32 %v124_v26, %v123_v37 }
 0x199   :  { %1338 = vpush %v125_v17 }
 0x19a   :  { %1340 = vpush %v914_v39 }
 0x1c1   :  { %s2195_s2 = spop %1334 }
 0x1c2   :  { %s1337_s25 = spop %1336 }
 0x1c3   :  { %v1127_v5 = vstv %s1337_s25 }
 0x1c4   :  { %1367 = vrcp.f32 %v1127_v5  ;;  %v1110_v31 = vpop.xlane.xlu2 %1109  ;;  %v1139_v40 = vand.u32 2147483648, %v1127_v5  ;;  %vm1133_vm4 = vweird.f32 %v1127_v5  ;;  %v1137_v21 = vand.u32 2147483647, %v1127_v5 }
 0x1c5   :  { %v1111_v50 = vrot.slane %v1110_v31, 4 }
 0x1c6   :  { %v1140_v61 = vor.u32 1.1754944e-38, %v1139_v40  ;;  %vm1138_vm8 = vcmp.eq.f32.partialorder %v1137_v21, 8.507059e+37 }
 0x1c7   :  { %v1112_v35 = vadd.f32 %v1111_v50, %v1110_v31 }
 0x1c9   :  { %v1113_v48 = vrot.slane %v1112_v35, 2 }
 0x1ca   :  { %v1368_v49 = vpop.eup %1367  ;;  %s1339_s26 = spop %1338 }
 0x1cb   :  { %v1129_v19 = vmul.f32 %v1368_v49, %v1127_v5  ;;  %v1114_v28 = vadd.f32 %v1113_v48, %v1112_v35  ;;  %vm1134_vm5 = vweird.f32 %v1368_v49  ;;  %s1341_s27 = spop %1340 }
 0x1cc   :  { %vm1135_vm6 = vmor %vm1133_vm4, %vm1134_vm5  ;;  %s916_s28 = smul.f32 2.0, %s1341_s27 }
 0x1cd   :  { %v1130_v32 = vsub.f32 1.0, %v1129_v19  ;;  %v1115_v59 = vrot.slane %v1114_v28, 1 }
 0x1ce   :  { %s917_s29 = ssub.f32 512.0, %s916_s28 }
 0x1cf   :  { %v1131_v20 = vmul.f32 %v1368_v49, %v1130_v32  ;;  %v1116_v30 = vadd.f32 %v1115_v59, %v1114_v28 }
 0x1d1   :  { %v1132_v41 = vadd.f32 %v1368_v49, %v1131_v20  ;;  %1342 = vpush %v1116_v30 }
 0x1d3   :  { %v1136_v56 = vsel %vm1135_vm6, %v1368_v49, %v1132_v41 }
 0x1d4   :  { %v1141_v62 = vsel %vm1138_vm8, %v1140_v61, %v1136_v56 }
 0x1d5   :  { %1344 = vpush %v1141_v62 }
 0x1d6   :  { %1346 = vpush %v1152_v63 }
 0x202   :  { %s1343_s30 = spop %1342 }
 0x203   :  { %s1118_s5 = sadd.f32 %s1343_s30, %s917_s29 }
 0x205   :  { %v1156_v29 = vstv %s1118_s5 }
 0x206   :  { %1369 = vrsqrt.f32 %v1156_v29  ;;  %vm1164_vm9 = vcmp.eq.f32.partialorder %v1156_v29, inf  ;;  %v1167_v42 = vand.u32 2147483648, %v1156_v29  ;;  %vm1166_vm10 = vcmp.eq.f32.partialorder %v1156_v29, 0.0  ;;  %s1345_s6 = spop %1344 }
 0x207   :  { %s1143_s7 = smul.f32 %s1345_s6, %s2195_s2  ;;  %s1347_s9 = spop %1346 }
 0x209   :  { %s1145_s8 = smul.f32 %s1339_s26, %s1143_s7 }
 0x20b   :  { %s1154_s12 = smul.f32 %s1347_s9, %s1145_s8 }
 0x20c   :  { %v1370_v9 = vpop.eup %1369 }
 0x20d   :  { %v1158_v46 = vmul.f32 %v1370_v9, %v1156_v29 }
 0x20f   :  { %v1159_v10 = vmul.f32 %v1370_v9, %v1158_v46 }
 0x211   :  { %v1160_v2 = vmul.f32 0.5, %v1159_v10 }
 0x213   :  { %v1161_v11 = vsub.f32 1.5, %v1160_v2 }
 0x215   :  { %v1162_v22 = vmul.f32 %v1370_v9, %v1161_v11 }
 0x217   :  { %v1163_v23 = vmul.f32 %v1162_v22, %v1156_v29 }
 0x219   :  { %v1165_v4 = vsel %vm1164_vm9, %v1156_v29, %v1163_v23 }
 0x21a   :  { %v1168_v43 = vsel %vm1166_vm10, %v1167_v42, %v1165_v4 }
 0x21b   :  { %1348 = vpush %v1168_v43 }
 0x24c   :  { %s1349_s10 = spop %1348 }
 0x24d   :  { %s1170_s11 = smul.f32 0.001, %s1349_s10 }
 0x24f   :  { %s1179_s16 = smul.f32 %s1347_s9, %s1170_s11 }
 0x251   :  { %s1180_s17 = sadd.f32 %s1179_s16, %s1154_s12 }
 0x253   :  { %1182 = sst [smem:[#allocation6]] %s1180_s17 }
 0x254   :  { %1191 = dma.smem_to_hbm %s1417_s18, 16, %s1189_s15, [#allocation5]  }
 0x255   :  { %1409 = dma.done.wait [#allocation5], 16  }
 0x256   :  { %1410 = vsyncadd [#allocation5], 4294967280 }
 0x257   :  { %1196 = sfence }
 0x258   :  { %1197 = vsyncpa [#allocation4], 1 }
 0x259   :  { %1198 = vsyncpa [#allocation5], 1 }

</bundles_post_ra>
